<compile_context>
chip_gen: v7x
topology: tpu7x:2x2x1
jax: 0.10.0
libtpu: 0.0.40
codegen_flags: <defaults>
</compile_context>

<pallas_src>
import functools

import jax
import jax.numpy as jnp
from jax.experimental import pallas as pl
from jax.experimental.pallas import tpu as pltpu

BN_EPS = 1e-5
_LANE = 128
_SUBLANE = 8
# Conservative working-set budget so the same tiling fits v5e/v6e (128 MiB physical)
# and v7x (64 MiB physical, 32 MiB scoped default).
_VMEM_BUDGET = 20 * 1024 * 1024
_VMEM_LIMIT = 32 * 1024 * 1024


def _round_up(x, m):
    return (x + m - 1) // m * m


def _pick_tm(m, kp, coutp):
    """Largest row tile (multiple of 8) whose double-buffered working set fits."""
    for tm in (1024, 512, 256, 128, 64, 32, 16, 8):
        if tm > _round_up(m, _SUBLANE):
            continue
        need = (2 * tm * kp              # patches tile (double buffered)
                + 2 * tm * coutp         # conv output tile (double buffered)
                + 2 * kp * coutp         # weights (resident; counted x2 for safety)
                + 2 * _SUBLANE * coutp   # per-tile stats block
                ) * 4
        if need <= _VMEM_BUDGET:
            return tm
    return _SUBLANE


# ----------------------------- Pallas kernels ------------------------------ #

def _conv_stats_kernel(p_ref, w_ref, conv_ref, stats_ref):
    # p_ref: [tm, Kp]  w_ref: [Kp, Coutp]
    # conv_ref: [tm, Coutp]  stats_ref: [8, Coutp] (row0=sum, row1=sum of squares)
    conv = jnp.dot(p_ref[...], w_ref[...], preferred_element_type=jnp.float32)
    conv_ref[...] = conv
    s = jnp.sum(conv, axis=0, keepdims=True)              # [1, Coutp]
    sq = jnp.sum(conv * conv, axis=0, keepdims=True)      # [1, Coutp]
    row = jax.lax.broadcasted_iota(jnp.int32, (_SUBLANE, conv.shape[1]), 0)
    stats_ref[...] = jnp.where(row == 0, s, jnp.where(row == 1, sq, 0.0))


def _bn_relu_kernel(conv_ref, scale_ref, shift_ref, out_ref):
    # conv_ref/out_ref: [tm, Coutp]  scale_ref/shift_ref: [1, Coutp]
    out_ref[...] = jnp.maximum(conv_ref[...] * scale_ref[...] + shift_ref[...], 0.0)


# ------------------------------ JAX glue ----------------------------------- #

def _im2col_3d(x_ndhwc, stride):
    """x_ndhwc: [N, D, H, W, C] -> patches [N*Do*Ho*Wo, 27*C] (tap-major, C-minor)."""
    n, d, h, w, c = x_ndhwc.shape
    xp = jnp.pad(x_ndhwc, ((0, 0), (1, 1), (1, 1), (1, 1), (0, 0)))
    do = (d + 2 - 3) // stride + 1
    ho = (h + 2 - 3) // stride + 1
    wo = (w + 2 - 3) // stride + 1
    cols = []
    for kd in range(3):
        for kh in range(3):
            for kw in range(3):
                sl = xp[:, kd:kd + stride * (do - 1) + 1:stride,
                           kh:kh + stride * (ho - 1) + 1:stride,
                           kw:kw + stride * (wo - 1) + 1:stride, :]
                cols.append(sl)
    patches = jnp.stack(cols, axis=-2)                 # [N, Do, Ho, Wo, 27, C]
    patches = patches.reshape(n * do * ho * wo, 27 * c)
    return patches, (n, do, ho, wo)


@functools.partial(jax.jit, static_argnames=("downsample",))
def block_forward(x_ncdhw, conv_w, conv_b, bn_gamma, bn_beta, *, downsample):
    """Forward pass of Block.

    x_ncdhw : [N, Cin, D, H, W]
    conv_w  : [Cout, Cin, 3, 3, 3] (PyTorch layout), conv_b/bn_gamma/bn_beta: [Cout]
    returns : [N, Cout, Do, Ho, Wo]
    """
    del conv_b  # bias cancels exactly in training-mode BatchNorm (mean shifts, var unchanged)
    stride = 2 if downsample else 1
    cout, cin = conv_w.shape[0], conv_w.shape[1]

    # ---- glue: NCDHW -> NDHWC, im2col ----
    x_ndhwc = jnp.transpose(x_ncdhw, (0, 2, 3, 4, 1)).astype(jnp.float32)
    patches, (n, do, ho, wo) = _im2col_3d(x_ndhwc, stride)      # [M, 27*Cin]
    m, k = patches.shape

    kp = _round_up(k, _LANE)
    coutp = _round_up(cout, _LANE)
    tm = _pick_tm(m, kp, coutp)
    mp = _round_up(m, tm)
    num_tiles = mp // tm

    # ---- lane/sublane-dense padded operands (zero pad -> zero contribution) ----
    patches_p = jnp.pad(patches, ((0, mp - m), (0, kp - k)))
    w2d = jnp.transpose(conv_w, (2, 3, 4, 1, 0)).reshape(k, cout).astype(jnp.float32)
    w_p = jnp.pad(w2d, ((0, kp - k), (0, coutp - cout)))
    gamma_p = jnp.pad(bn_gamma.astype(jnp.float32), (0, coutp - cout))
    beta_p = jnp.pad(bn_beta.astype(jnp.float32), (0, coutp - cout))

    cparams = pltpu.CompilerParams(
        dimension_semantics=("parallel",),          # shards M tiles across TCs (v7x)
        vmem_limit_bytes=_VMEM_LIMIT)

    # ---- pass 1: tiled GEMM + per-tile channel sum / sum-of-squares ----
    conv_p, stats = pl.pallas_call(
        _conv_stats_kernel,
        out_shape=(jax.ShapeDtypeStruct((mp, coutp), jnp.float32),
                   jax.ShapeDtypeStruct((num_tiles * _SUBLANE, coutp), jnp.float32)),
        grid=(num_tiles,),
        in_specs=[pl.BlockSpec((tm, kp), lambda i: (i, 0)),
                  pl.BlockSpec((kp, coutp), lambda i: (0, 0))],
        out_specs=(pl.BlockSpec((tm, coutp), lambda i: (i, 0)),
                   pl.BlockSpec((_SUBLANE, coutp), lambda i: (i, 0))),
        compiler_params=cparams,
        cost_estimate=pl.CostEstimate(
            flops=2 * mp * kp * coutp,
            transcendentals=0,
            bytes_accessed=4 * (mp * kp + kp * coutp + mp * coutp)),
    )(patches_p, w_p)

    # ---- tiny cross-tile reduction + fold BN into per-channel scale/shift ----
    stats = stats.reshape(num_tiles, _SUBLANE, coutp)
    ch_sum = jnp.sum(stats[:, 0, :], axis=0)
    ch_sqsum = jnp.sum(stats[:, 1, :], axis=0)
    m_f = jnp.float32(m)                      # padded rows are all-zero -> contribute 0
    mean = ch_sum / m_f
    var = jnp.maximum(ch_sqsum / m_f - mean * mean, 0.0)   # biased var (PyTorch BN train)
    inv_std = jax.lax.rsqrt(var + BN_EPS)
    scale = gamma_p * inv_std                               # [Coutp]
    shift = beta_p - mean * scale                           # [Coutp]

    # ---- pass 2: tiled normalize (one mul+add) + ReLU ----
    out_p = pl.pallas_call(
        _bn_relu_kernel,
        out_shape=jax.ShapeDtypeStruct((mp, coutp), jnp.float32),
        grid=(num_tiles,),
        in_specs=[pl.BlockSpec((tm, coutp), lambda i: (i, 0)),
                  pl.BlockSpec((1, coutp), lambda i: (0, 0)),
                  pl.BlockSpec((1, coutp), lambda i: (0, 0))],
        out_specs=pl.BlockSpec((tm, coutp), lambda i: (i, 0)),
        compiler_params=cparams,
        cost_estimate=pl.CostEstimate(
            flops=2 * mp * coutp,
            transcendentals=0,
            bytes_accessed=4 * 2 * mp * coutp),
    )(conv_p, scale.reshape(1, coutp), shift.reshape(1, coutp))

    # ---- glue: [M, Cout] -> NCDHW ----
    out = out_p[:m, :cout].reshape(n, do, ho, wo, cout)
    return jnp.transpose(out, (0, 4, 1, 2, 3))


# ------------------------------ reference ---------------------------------- #

def _reference(x, w, b, gamma, beta, stride):
    conv = jax.lax.conv_general_dilated(
        x, w, window_strides=(stride,) * 3, padding=[(1, 1)] * 3,
        dimension_numbers=("NCDHW", "OIDHW", "NCDHW"))
    conv = conv + b.reshape(1, -1, 1, 1, 1)
    mean = jnp.mean(conv, axis=(0, 2, 3, 4), keepdims=True)
    var = jnp.mean((conv - mean) ** 2, axis=(0, 2, 3, 4), keepdims=True)
    y = (conv - mean) * jax.lax.rsqrt(var + BN_EPS)
    y = y * gamma.reshape(1, -1, 1, 1, 1) + beta.reshape(1, -1, 1, 1, 1)
    return jnp.maximum(y, 0.0)


if __name__ == "__main__":
    # in_channels=4, out_channels=8, downsample=True
    # x: [N=2, Cin=4, D=8, H=8, W=8] -> output [2, 8, 4, 4, 4]
    in_channels, out_channels, downsample = 4, 8, True

    key = jax.random.PRNGKey(0)
    kx, kw, kb = jax.random.split(key, 3)

    x = jax.random.normal(kx, (2, in_channels, 8, 8, 8), dtype=jnp.float32)
    conv_w = 0.1 * jax.random.normal(
        kw, (out_channels, in_channels, 3, 3, 3), dtype=jnp.float32)
    conv_b = 0.01 * jax.random.normal(kb, (out_channels,), dtype=jnp.float32)
    bn_gamma = jnp.ones((out_channels,), jnp.float32)   # PyTorch BN default init
    bn_beta = jnp.zeros((out_channels,), jnp.float32)

    y = block_forward(x, conv_w, conv_b, bn_gamma, bn_beta, downsample=downsample)
    jax.block_until_ready(y)
    assert y.shape == (2, out_channels, 4, 4, 4), y.shape

    y_ref = _reference(x, conv_w, conv_b, bn_gamma, bn_beta, stride=2)
    max_err = float(jnp.max(jnp.abs(y - y_ref)))
    assert jnp.allclose(y, y_ref, atol=5e-2, rtol=5e-2), max_err

    print("KERNEL_OK")
</pallas_src>

<mosaic_0001>
module attributes {stable_mosaic.version = 11 : i64} {
  func.func @_conv_stats_kernel(%arg0: i32, %arg1: memref<128x128xf32, #tpu.memory_space<vmem>>, %arg2: memref<128x128xf32, #tpu.memory_space<vmem>>, %arg3: memref<128x128xf32, #tpu.memory_space<vmem>>, %arg4: memref<8x128xf32, #tpu.memory_space<vmem>>) attributes {dimension_semantics = [#tpu.dimension_semantics<parallel>], iteration_bounds = array<i64: 1>, scalar_prefetch = 0 : i64, scratch_operands = 0 : i64, tpu.core_type = #tpu.core_type<tc>, window_params = [{transform_indices = @transform_0, window_bounds = array<i64: 128, 128>}, {pipeline_mode = #tpu.pipeline_mode<synchronous>, transform_indices = @transform_1, window_bounds = array<i64: 128, 128>}, {transform_indices = @transform_2, window_bounds = array<i64: 128, 128>}, {transform_indices = @transform_3, window_bounds = array<i64: 8, 128>}]} {
    %c0 = arith.constant 0 : index
    %c0_0 = arith.constant 0 : index
    %0 = vector.load %arg1[%c0, %c0_0] : memref<128x128xf32, #tpu.memory_space<vmem>>, vector<128x128xf32>
    %c0_1 = arith.constant 0 : index
    %c0_2 = arith.constant 0 : index
    %1 = vector.load %arg2[%c0_1, %c0_2] : memref<128x128xf32, #tpu.memory_space<vmem>>, vector<128x128xf32>
    %cst = arith.constant dense<0.000000e+00> : vector<128x128xf32>
    %2 = tpu.matmul %0, %1, %cst {dimension_numbers = #tpu.dot_dimension_numbers<[1], [0], [0], [1], [0, 0, 1, 1], [], []>} : vector<128x128xf32>, vector<128x128xf32>, vector<128x128xf32> -> vector<128x128xf32>
    %c0_3 = arith.constant 0 : index
    %c0_4 = arith.constant 0 : index
    %3 = vector.load %arg3[%c0_3, %c0_4] : memref<128x128xf32, #tpu.memory_space<vmem>>, vector<128x128xf32>
    tpu.vector_store %arg3[%c0_3, %c0_4], %2 {strides = array<i32>} : memref<128x128xf32, #tpu.memory_space<vmem>>, vector<128x128xf32>,
    %cst_5 = arith.constant dense<0.000000e+00> : vector<128xf32>
    %4 = vector.multi_reduction <add>, %2, %cst_5 [0] : vector<128x128xf32> to vector<128xf32>
    %5 = vector.shape_cast %4 : vector<128xf32> to vector<1x128xf32>
    %6 = arith.mulf %2, %2 : vector<128x128xf32>
    %cst_6 = arith.constant dense<0.000000e+00> : vector<128xf32>
    %7 = vector.multi_reduction <add>, %6, %cst_6 [0] : vector<128x128xf32> to vector<128xf32>
    %8 = vector.shape_cast %7 : vector<128xf32> to vector<1x128xf32>
    %9 = tpu.iota {dimensions = array<i32: 0>} : vector<8x128xi32>
    %c0_i32 = arith.constant 0 : i32
    %10 = vector.broadcast %c0_i32 : i32 to vector<8x128xi32>
    %11 = arith.cmpi eq, %9, %10 : vector<8x128xi32>
    %c1_i32 = arith.constant 1 : i32
    %12 = vector.broadcast %c1_i32 : i32 to vector<8x128xi32>
    %13 = arith.cmpi eq, %9, %12 : vector<8x128xi32>
    %cst_7 = arith.constant 0.000000e+00 : f32
    %14 = vector.shape_cast %8 : vector<1x128xf32> to vector<1x128xf32>
    %15 = vector.broadcast %14 : vector<1x128xf32> to vector<8x128xf32>
    %16 = vector.broadcast %cst_7 : f32 to vector<8x128xf32>
    %17 = arith.select %13, %15, %16 : vector<8x128xi1>, vector<8x128xf32>
    %18 = vector.shape_cast %5 : vector<1x128xf32> to vector<1x128xf32>
    %19 = vector.broadcast %18 : vector<1x128xf32> to vector<8x128xf32>
    %20 = arith.select %11, %19, %17 : vector<8x128xi1>, vector<8x128xf32>
    %c0_8 = arith.constant 0 : index
    %c0_9 = arith.constant 0 : index
    %21 = vector.load %arg4[%c0_8, %c0_9] : memref<8x128xf32, #tpu.memory_space<vmem>>, vector<8x128xf32>
    tpu.vector_store %arg4[%c0_8, %c0_9], %20 {strides = array<i32>} : memref<8x128xf32, #tpu.memory_space<vmem>>, vector<8x128xf32>,
    return
  }
  func.func @transform_0(%arg0: i32) -> (i32, i32) {
    %c0_i32 = arith.constant 0 : i32
    %c0_i32_0 = arith.constant 0 : i32
    return %arg0, %c0_i32 : i32, i32
  }
  func.func @transform_1(%arg0: i32) -> (i32, i32) {
    %c0_i32 = arith.constant 0 : i32
    %c0_i32_0 = arith.constant 0 : i32
    %c0_i32_1 = arith.constant 0 : i32
    return %c0_i32, %c0_i32_0 : i32, i32
  }
  func.func @transform_2(%arg0: i32) -> (i32, i32) {
    %c0_i32 = arith.constant 0 : i32
    %c0_i32_0 = arith.constant 0 : i32
    return %arg0, %c0_i32 : i32, i32
  }
  func.func @transform_3(%arg0: i32) -> (i32, i32) {
    %c0_i32 = arith.constant 0 : i32
    %c0_i32_0 = arith.constant 0 : i32
    return %arg0, %c0_i32 : i32, i32
  }
}

module attributes {stable_mosaic.version = 11 : i64} {
  func.func @_bn_relu_kernel(%arg0: i32, %arg1: memref<128x128xf32, #tpu.memory_space<vmem>>, %arg2: memref<1x128xf32, #tpu.memory_space<vmem>>, %arg3: memref<1x128xf32, #tpu.memory_space<vmem>>, %arg4: memref<128x128xf32, #tpu.memory_space<vmem>>) attributes {dimension_semantics = [#tpu.dimension_semantics<parallel>], iteration_bounds = array<i64: 1>, scalar_prefetch = 0 : i64, scratch_operands = 0 : i64, tpu.core_type = #tpu.core_type<tc>, window_params = [{transform_indices = @transform_0, window_bounds = array<i64: 128, 128>}, {pipeline_mode = #tpu.pipeline_mode<synchronous>, transform_indices = @transform_1, window_bounds = array<i64: 1, 128>}, {pipeline_mode = #tpu.pipeline_mode<synchronous>, transform_indices = @transform_2, window_bounds = array<i64: 1, 128>}, {transform_indices = @transform_3, window_bounds = array<i64: 128, 128>}]} {
    %c0 = arith.constant 0 : index
    %c0_0 = arith.constant 0 : index
    %0 = vector.load %arg1[%c0, %c0_0] : memref<128x128xf32, #tpu.memory_space<vmem>>, vector<128x128xf32>
    %c0_1 = arith.constant 0 : index
    %c0_2 = arith.constant 0 : index
    %1 = vector.load %arg2[%c0_1, %c0_2] : memref<1x128xf32, #tpu.memory_space<vmem>>, vector<1x128xf32>
    %2 = vector.broadcast %1 : vector<1x128xf32> to vector<128x128xf32>
    %3 = arith.mulf %0, %2 : vector<128x128xf32>
    %c0_3 = arith.constant 0 : index
    %c0_4 = arith.constant 0 : index
    %4 = vector.load %arg3[%c0_3, %c0_4] : memref<1x128xf32, #tpu.memory_space<vmem>>, vector<1x128xf32>
    %5 = vector.broadcast %4 : vector<1x128xf32> to vector<128x128xf32>
    %6 = arith.addf %3, %5 : vector<128x128xf32>
    %cst = arith.constant 0.000000e+00 : f32
    %7 = vector.broadcast %cst : f32 to vector<128x128xf32>
    %8 = arith.maximumf %6, %7 : vector<128x128xf32>
    %c0_5 = arith.constant 0 : index
    %c0_6 = arith.constant 0 : index
    %9 = vector.load %arg4[%c0_5, %c0_6] : memref<128x128xf32, #tpu.memory_space<vmem>>, vector<128x128xf32>
    tpu.vector_store %arg4[%c0_5, %c0_6], %8 {strides = array<i32>} : memref<128x128xf32, #tpu.memory_space<vmem>>, vector<128x128xf32>,
    return
  }
  func.func @transform_0(%arg0: i32) -> (i32, i32) {
    %c0_i32 = arith.constant 0 : i32
    %c0_i32_0 = arith.constant 0 : i32
    return %arg0, %c0_i32 : i32, i32
  }
  func.func @transform_1(%arg0: i32) -> (i32, i32) {
    %c0_i32 = arith.constant 0 : i32
    %c0_i32_0 = arith.constant 0 : i32
    %c0_i32_1 = arith.constant 0 : i32
    return %c0_i32, %c0_i32_0 : i32, i32
  }
  func.func @transform_2(%arg0: i32) -> (i32, i32) {
    %c0_i32 = arith.constant 0 : i32
    %c0_i32_0 = arith.constant 0 : i32
    %c0_i32_1 = arith.constant 0 : i32
    return %c0_i32, %c0_i32_0 : i32, i32
  }
  func.func @transform_3(%arg0: i32) -> (i32, i32) {
    %c0_i32 = arith.constant 0 : i32
    %c0_i32_0 = arith.constant 0 : i32
    return %arg0, %c0_i32 : i32, i32
  }
}

</mosaic_0001>

<bundles_post_ra>
// kernel: block_forward.3
= control target key start
LH: loop header
LB: loop body
LE: loop exit
PB: predicated region body
PF: predicated region fallthrough
CT: control target
= control target key end

     0   :  { %s261_s0 = inlined_call_operand.vmem [shape: f32[128,128], index: 0, kind: input, shape index: {}]   ;;  %s262_s1 = inlined_call_operand.vmem [shape: f32[1,128], index: 1, kind: input, shape index: {}]   ;;  %s263_s2 = inlined_call_operand.vmem [shape: f32[1,128], index: 2, kind: input, shape index: {}]   ;;  %s264_s3 = inlined_call_operand.hbm [shape: f32[128,128], index: 3, kind: output, shape index: {}]  }
   0x1   :  { %v15_v0 = vld [vmem:[%s261_s0] sm:$0xff]  ;;  %v16_v4 = vld [vmem:[%s261_s0 + $0x8] sm:$0xff]  ;;  %v17_v5 = vld [vmem:[%s261_s0 + $0x10] sm:$0xff] }
   0x2   :  { %v125_v1 = vld [vmem:[%s262_s1] ss:$0 sm:$0xff]  ;;  %v18_v6 = vld [vmem:[%s261_s0 + $0x18] sm:$0xff]  ;;  %v20_v11 = vld [vmem:[%s261_s0 + $0x28] sm:$0xff] }
   0x3   :  { %v186_v2 = vld [vmem:[%s263_s2] ss:$0 sm:$0xff]  ;;  %v38_v3 = vmul.f32 %v125_v1, %v15_v0  ;;  %v39_v7 = vmul.f32 %v125_v1, %v16_v4  ;;  %v40_v8 = vmul.f32 %v125_v1, %v17_v5  ;;  %v41_v9 = vmul.f32 %v125_v1, %v18_v6  ;;  %v21_v12 = vld [vmem:[%s261_s0 + $0x30] sm:$0xff]  ;;  %v22_v17 = vld [vmem:[%s261_s0 + $0x38] sm:$0xff] }
   0x4   :  { %v19_v10 = vld [vmem:[%s261_s0 + $0x20] sm:$0xff]  ;;  %v43_v15 = vmul.f32 %v125_v1, %v20_v11  ;;  %v44_v16 = vmul.f32 %v125_v1, %v21_v12  ;;  %v45_v21 = vmul.f32 %v125_v1, %v22_v17  ;;  %v24_v23 = vld [vmem:[%s261_s0 + $0x48] sm:$0xff]  ;;  %v25_v24 = vld [vmem:[%s261_s0 + $0x50] sm:$0xff] }
   0x5   :  { %v61_v13 = vadd.f32 %v186_v2, %v38_v3  ;;  %v42_v14 = vmul.f32 %v125_v1, %v19_v10  ;;  %v62_v18 = vadd.f32 %v186_v2, %v39_v7  ;;  %v63_v19 = vadd.f32 %v186_v2, %v40_v8  ;;  %v23_v22 = vld [vmem:[%s261_s0 + $0x40] sm:$0xff]  ;;  %v26_v29 = vld [vmem:[%s261_s0 + $0x58] sm:$0xff]  ;;  %v28_v31 = vld [vmem:[%s261_s0 + $0x68] sm:$0xff] }
   0x6   :  { %v64_v20 = vadd.f32 %v186_v2, %v41_v9  ;;  %v66_v27 = vadd.f32 %v186_v2, %v43_v15  ;;  %v67_v28 = vadd.f32 %v186_v2, %v44_v16  ;;  %v27_v30 = vld [vmem:[%s261_s0 + $0x60] sm:$0xff]  ;;  %v68_v35 = vadd.f32 %v186_v2, %v45_v21  ;;  %v29_v36 = vld [vmem:[%s261_s0 + $0x70] sm:$0xff] }
   0x7   :  { %v77_v25 = vmax.f32 %v61_v13, 0.0  ;;  %v65_v26 = vadd.f32 %v186_v2, %v42_v14  ;;  %v78_v32 = vmax.f32 %v62_v18, 0.0  ;;  %v79_v33 = vmax.f32 %v63_v19, 0.0 }
   0x8   :  { %v80_v34 = vmax.f32 %v64_v20, 0.0 }
   0x9   :  { %8 = vsyncpa [#allocation3], 0  ;;  %93 = vst [vmem:[#allocation2] sm:$0xff] %v77_v25  ;;  %v81_v37 = vmax.f32 %v65_v26, 0.0  ;;  %v82_v38 = vmax.f32 %v66_v27, 0.0  ;;  %v83_v39 = vmax.f32 %v67_v28, 0.0  ;;  %v46_v40 = vmul.f32 %v125_v1, %v23_v22 }
   0xa   :  { %v30_v41 = vld [vmem:[%s261_s0 + $0x78] sm:$0xff]  ;;  %94 = vst [vmem:[#allocation2 + $0x8] sm:$0xff] %v78_v32  ;;  %95 = vst [vmem:[#allocation2 + $0x10] sm:$0xff] %v79_v33  ;;  %v84_v42 = vmax.f32 %v68_v35, 0.0  ;;  %v47_v43 = vmul.f32 %v125_v1, %v24_v23  ;;  %v48_v44 = vmul.f32 %v125_v1, %v25_v24  ;;  %v49_v45 = vmul.f32 %v125_v1, %v26_v29  ;;  %s154_s0 = smov [#allocation2]  }
   0xb   :  { %96 = vst [vmem:[#allocation2 + $0x18] sm:$0xff] %v80_v34  ;;  %97 = vst [vmem:[#allocation2 + $0x20] sm:$0xff] %v81_v37  ;;  %v69_v46 = vadd.f32 %v186_v2, %v46_v40  ;;  %v50_v47 = vmul.f32 %v125_v1, %v27_v30  ;;  %v51_v48 = vmul.f32 %v125_v1, %v28_v31  ;;  %s114_s19 = sshll.u32 %s154_s0, 4  ;;  %s115_s19 = int_to_ptr.vmem [resolvable:$true] %s114_s19 }
   0xc   :  { %98 = vst [vmem:[#allocation2 + $0x28] sm:$0xff] %v82_v38  ;;  %99 = vst [vmem:[#allocation2 + $0x30] sm:$0xff] %v83_v39  ;;  %v52_v49 = vmul.f32 %v125_v1, %v29_v36  ;;  %v70_v50 = vadd.f32 %v186_v2, %v47_v43  ;;  %v71_v51 = vadd.f32 %v186_v2, %v48_v44  ;;  %s130_s20 = scalar_lea.vmem %s115_s19, 2048  ;;  %p135_p1 = scmp.lt.s32.totalorder %s115_s19, %s115_s19 }
   0xd   :  { %100 = vst [vmem:[#allocation2 + $0x38] sm:$0xff] %v84_v42  ;;  %v72_v52 = vadd.f32 %v186_v2, %v49_v45  ;;  %v53_v53 = vmul.f32 %v125_v1, %v30_v41  ;;  %v85_v54 = vmax.f32 %v69_v46, 0.0  ;;  %v73_v55 = vadd.f32 %v186_v2, %v50_v47  ;;  %p131_p0 = scmp.ne.s32.totalorder %s115_s19, %s130_s20  ;;  %p136_p2 = scmp.lt.s32.totalorder %s130_s20, %s130_s20 }
   0xe   :  { %v74_v56 = vadd.f32 %v186_v2, %v51_v48  ;;  %v75_v57 = vadd.f32 %v186_v2, %v52_v49  ;;  %v86_v58 = vmax.f32 %v70_v50, 0.0  ;;  %v87_v59 = vmax.f32 %v71_v51, 0.0 }
   0xf   :  { %v88_v60 = vmax.f32 %v72_v52, 0.0  ;;  %v76_v61 = vadd.f32 %v186_v2, %v53_v53  ;;  %101 = vst [vmem:[#allocation2 + $0x40] sm:$0xff] %v85_v54  ;;  %v89_v62 = vmax.f32 %v73_v55, 0.0  ;;  %p137_p3 = por %p136_p2, %p135_p1 }
  0x10   :  { %v90_v63 = vmax.f32 %v74_v56, 0.0  ;;  %v91_v0 = vmax.f32 %v75_v57, 0.0  ;;  %102 = vst [vmem:[#allocation2 + $0x48] sm:$0xff] %v86_v58  ;;  %103 = vst [vmem:[#allocation2 + $0x50] sm:$0xff] %v87_v59 }
  0x11   :  { %104 = vst [vmem:[#allocation2 + $0x58] sm:$0xff] %v88_v60  ;;  %v92_v1 = vmax.f32 %v76_v61, 0.0  ;;  %105 = vst [vmem:[#allocation2 + $0x60] sm:$0xff] %v89_v62  ;;  %p138_p4 = pnand %p137_p3, %p131_p0 }
  0x12   :  { %106 = vst [vmem:[#allocation2 + $0x68] sm:$0xff] %v90_v63  ;;  %107 = vst [vmem:[#allocation2 + $0x70] sm:$0xff] %v91_v0 }
  0x13   :  { %108 = vst [vmem:[#allocation2 + $0x78] sm:$0xff] %v92_v1 }
  0x14   :  { %141 = shalt.err (!%p138_p4)
}
  0x15   :  { %s142_s23 = scalar_lea.hbm %s264_s3, 2048 }
  0x16   :  { %p143_p5 = scmp.ne.s32.totalorder %s264_s3, %s142_s23  ;;  %p146_p6 = scmp.lt.u32.totalorder %s142_s23, %s264_s3 }
  0x18   :  { %p148_p7 = pnand %p146_p6, %p143_p5 }
  0x1a   :  { %151 = shalt.err (!%p148_p7)
}
  0x1b   :  { %s155_s26 = smov 128   ;;  %s156_s27 = smov 8  }
  0x1c   :  { %120 = dma.vmem_to_hbm [thread:$0]  %s115_s19, 2048, %s264_s3, [#allocation3], %s155_s26, %s155_s26, %s156_s27  }
  0x1d   :  { %152 = dma.done.wait [#allocation3], 2048  }
  0x1e   :  { %153 = vsyncadd [#allocation3], 4294965248 }
  0x1f   :  { %124 = vsyncpa [#allocation3], 1 }

// kernel: block_forward.2
= control target key start
LH: loop header
LB: loop body
LE: loop exit
PB: predicated region body
PF: predicated region fallthrough
CT: control target
= control target key end

     0   :  { %s582_s1 = inlined_call_operand.vmem [shape: f32[128,128], index: 1, kind: input, shape index: {}]   ;;  %s583_s0 = inlined_call_operand.vmem [shape: f32[128,128], index: 0, kind: input, shape index: {}]   ;;  %s584_s2 = inlined_call_operand.vmem [shape: f32[128,128], index: 2, kind: output, shape index: {0}]   ;;  %s585_s3 = inlined_call_operand.vmem [shape: f32[8,128], index: 3, kind: output, shape index: {1}]  }
   0x1   :  { %v29_v0 = vld [vmem:[%s582_s1] sm:$0xff]  ;;  %v30_v1 = vld [vmem:[%s582_s1 + $0x8] sm:$0xff]  ;;  %v31_v2 = vld [vmem:[%s582_s1 + $0x10] sm:$0xff] }
   0x2   :  { %v367_v3 = vpack.c.bf16 %v30_v1, %v29_v0  ;;  %v32_v4 = vld [vmem:[%s582_s1 + $0x18] sm:$0xff]  ;;  %v33_v6 = vld [vmem:[%s582_s1 + $0x20] sm:$0xff]  ;;  %v34_v7 = vld [vmem:[%s582_s1 + $0x28] sm:$0xff] }
   0x3   :  { %v371_v5 = vpack.c.bf16 %v32_v4, %v31_v2  ;;  %v375_v8 = vpack.c.bf16 %v34_v7, %v33_v6  ;;  %v13_v9 = vld [vmem:[%s583_s0] sm:$0xff]  ;;  %v35_v10 = vld [vmem:[%s582_s1 + $0x30] sm:$0xff]  ;;  %v36_v11 = vld [vmem:[%s582_s1 + $0x38] sm:$0xff] }
   0x4   :  { %368 = vmatprep.subr.bf16.mxu0 %v367_v3  ;;  %399 = vmatprep.subr.bf16.mxu1 %v367_v3  ;;  %v21_v12 = vld [vmem:[%s583_s0 + $0x40] sm:$0xff]  ;;  %v379_v13 = vpack.c.bf16 %v36_v11, %v35_v10  ;;  %v38_v15 = vld [vmem:[%s582_s1 + $0x48] sm:$0xff]  ;;  %v39_v17 = vld [vmem:[%s582_s1 + $0x50] sm:$0xff] }
   0x5   :  { %370 = vmatpush3.bf16.msra.mxu0 %v367_v3  ;;  %407 = vmatpush3.bf16.msra.mxu1 %v367_v3  ;;  %v37_v14 = vld [vmem:[%s582_s1 + $0x40] sm:$0xff]  ;;  %v40_v18 = vld [vmem:[%s582_s1 + $0x58] sm:$0xff]  ;;  %v42_v21 = vld [vmem:[%s582_s1 + $0x68] sm:$0xff] }
   0x6   :  { %372 = vmatprep.subr.bf16.mxu0 %v371_v5  ;;  %400 = vmatprep.subr.bf16.mxu1 %v371_v5  ;;  %v383_v16 = vpack.c.bf16 %v38_v15, %v37_v14  ;;  %v387_v19 = vpack.c.bf16 %v40_v18, %v39_v17  ;;  %v41_v20 = vld [vmem:[%s582_s1 + $0x60] sm:$0xff]  ;;  %v43_v23 = vld [vmem:[%s582_s1 + $0x70] sm:$0xff]  ;;  %v44_v24 = vld [vmem:[%s582_s1 + $0x78] sm:$0xff] }
   0x7   :  { %343 = vmatprep.mubr.f32.mxu0 %v13_v9  ;;  %355 = vmatprep.mubr.f32.mxu1 %v21_v12  ;;  %v391_v22 = vpack.c.bf16 %v42_v21, %v41_v20  ;;  %v395_v25 = vpack.c.bf16 %v44_v24, %v43_v23  ;;  %v14_v26 = vld [vmem:[%s583_s0 + $0x8] sm:$0xff]  ;;  %v15_v28 = vld [vmem:[%s583_s0 + $0x10] sm:$0xff]  ;;  %v16_v30 = vld [vmem:[%s583_s0 + $0x18] sm:$0xff] }
   0x8   :  { %v22_v27 = vld [vmem:[%s583_s0 + $0x48] sm:$0xff]  ;;  %v23_v29 = vld [vmem:[%s583_s0 + $0x50] sm:$0xff]  ;;  %v24_v31 = vld [vmem:[%s583_s0 + $0x58] sm:$0xff] }
   0x9   :  { %374 = vmatpush3.bf16.msra.mxu0 %v371_v5  ;;  %408 = vmatpush3.bf16.msra.mxu1 %v371_v5  ;;  %v17_v32 = vld [vmem:[%s583_s0 + $0x20] sm:$0xff]  ;;  %v18_v34 = vld [vmem:[%s583_s0 + $0x28] sm:$0xff]  ;;  %v19_v36 = vld [vmem:[%s583_s0 + $0x30] sm:$0xff] }
   0xa   :  { %376 = vmatprep.subr.bf16.mxu0 %v375_v8  ;;  %401 = vmatprep.subr.bf16.mxu1 %v375_v8  ;;  %v25_v33 = vld [vmem:[%s583_s0 + $0x60] sm:$0xff]  ;;  %v26_v35 = vld [vmem:[%s583_s0 + $0x68] sm:$0xff]  ;;  %v27_v37 = vld [vmem:[%s583_s0 + $0x70] sm:$0xff] }
   0xb   :  { %v20_v38 = vld [vmem:[%s583_s0 + $0x38] sm:$0xff] }
   0xc   :  { %v28_v39 = vld [vmem:[%s583_s0 + $0x78] sm:$0xff] }
   0xd   :  { %378 = vmatpush3.bf16.msra.mxu0 %v375_v8  ;;  %409 = vmatpush3.bf16.msra.mxu1 %v375_v8 }
   0xe   :  { %380 = vmatprep.subr.bf16.mxu0 %v379_v13  ;;  %402 = vmatprep.subr.bf16.mxu1 %v379_v13 }
  0x11   :  { %382 = vmatpush3.bf16.msra.mxu0 %v379_v13  ;;  %410 = vmatpush3.bf16.msra.mxu1 %v379_v13 }
  0x12   :  { %384 = vmatprep.subr.bf16.mxu0 %v383_v16  ;;  %403 = vmatprep.subr.bf16.mxu1 %v383_v16 }
  0x15   :  { %386 = vmatpush3.bf16.msra.mxu0 %v383_v16  ;;  %411 = vmatpush3.bf16.msra.mxu1 %v383_v16 }
  0x16   :  { %388 = vmatprep.subr.bf16.mxu0 %v387_v19  ;;  %404 = vmatprep.subr.bf16.mxu1 %v387_v19 }
  0x19   :  { %390 = vmatpush3.bf16.msra.mxu0 %v387_v19  ;;  %412 = vmatpush3.bf16.msra.mxu1 %v387_v19 }
  0x1a   :  { %392 = vmatprep.subr.bf16.mxu0 %v391_v22  ;;  %405 = vmatprep.subr.bf16.mxu1 %v391_v22 }
  0x1d   :  { %394 = vmatpush3.bf16.msra.mxu0 %v391_v22  ;;  %413 = vmatpush3.bf16.msra.mxu1 %v391_v22 }
  0x1e   :  { %396 = vmatprep.subr.bf16.mxu0 %v395_v25  ;;  %406 = vmatprep.subr.bf16.mxu1 %v395_v25 }
  0x21   :  { %398 = vmatpush3.bf16.msra.mxu0 %v395_v25  ;;  %414 = vmatpush3.bf16.msra.mxu1 %v395_v25 }
  0x24   :  { %344 = vmatmul.mubr.f32.vlgmr.msra.gmra.mrb[0].mxu0 %v14_v26  ;;  %356 = vmatmul.mubr.f32.vlgmr.msra.gmra.mrb[0].mxu1 %v22_v27 }
  0x25   :  { %346 = vmatprep.mubr.f32.mxu0 %v15_v28  ;;  %358 = vmatprep.mubr.f32.mxu1 %v23_v29 }
  0x28   :  { %347 = vmatmul.mubr.f32.gmra.mrb[2].mxu0 %v16_v30  ;;  %359 = vmatmul.mubr.f32.gmra.mrb[2].mxu1 %v24_v31 }
  0x29   :  { %349 = vmatprep.mubr.f32.mxu0 %v17_v32  ;;  %361 = vmatprep.mubr.f32.mxu1 %v25_v33 }
  0x2c   :  { %350 = vmatmul.mubr.f32.gmra.mrb[4].mxu0 %v18_v34  ;;  %362 = vmatmul.mubr.f32.gmra.mrb[4].mxu1 %v26_v35 }
  0x2d   :  { %352 = vmatprep.mubr.f32.mxu0 %v19_v36  ;;  %364 = vmatprep.mubr.f32.mxu1 %v27_v37 }
  0x30   :  { %353 = vmatmul.mubr.f32.gmra.mrb[6].mxu0 %v20_v38  ;;  %365 = vmatmul.mubr.f32.gmra.mrb[6].mxu1 %v28_v39 }
  0xf7   :  { %v345_v40 = vpop.f32.mrb[0].mxu0  ;;  %v357_v41 = vpop.f32.mrb[0].mxu1 }
  0xf8   :  { %191 = vst [vmem:[%s584_s2 + $0x8] sm:$0xff] %v345_v40  ;;  %v228_v42 = vmul.f32 %v345_v40, %v345_v40  ;;  %v111_v43 = vpop.f32.mrb[1].mxu0  ;;  %199 = vst [vmem:[%s584_s2 + $0x48] sm:$0xff] %v357_v41  ;;  %v151_v44 = vpop.f32.mrb[1].mxu1  ;;  %v236_v16 = vmul.f32 %v357_v41, %v357_v41 }
  0xf9   :  { %190 = vst [vmem:[%s584_s2] sm:$0xff] %v111_v43  ;;  %v206_v45 = vadd.f32 %v345_v40, %v111_v43  ;;  %v227_v46 = vmul.f32 %v111_v43, %v111_v43  ;;  %198 = vst [vmem:[%s584_s2 + $0x40] sm:$0xff] %v151_v44  ;;  %v235_v13 = vmul.f32 %v151_v44, %v151_v44 }
  0xfb   :  { %v243_v47 = vadd.f32 %v228_v42, %v227_v46  ;;  %v348_v48 = vpop.f32.mrb[2].mxu0  ;;  %v360_v49 = vpop.f32.mrb[2].mxu1 }
  0xfc   :  { %193 = vst [vmem:[%s584_s2 + $0x18] sm:$0xff] %v348_v48  ;;  %v121_v50 = vpop.f32.mrb[3].mxu0  ;;  %201 = vst [vmem:[%s584_s2 + $0x58] sm:$0xff] %v360_v49  ;;  %v161_v51 = vpop.f32.mrb[3].mxu1  ;;  %v230_v54 = vmul.f32 %v348_v48, %v348_v48  ;;  %v238_v22 = vmul.f32 %v360_v49, %v360_v49 }
  0xfd   :  { %192 = vst [vmem:[%s584_s2 + $0x10] sm:$0xff] %v121_v50  ;;  %v207_v52 = vadd.f32 %v206_v45, %v121_v50  ;;  %v229_v53 = vmul.f32 %v121_v50, %v121_v50  ;;  %200 = vst [vmem:[%s584_s2 + $0x50] sm:$0xff] %v161_v51  ;;  %v237_v19 = vmul.f32 %v161_v51, %v161_v51 }
  0xff   :  { %v244_v55 = vadd.f32 %v243_v47, %v229_v53  ;;  %v351_v56 = vpop.f32.mrb[4].mxu0  ;;  %v208_v57 = vadd.f32 %v348_v48, %v207_v52  ;;  %v363_v58 = vpop.f32.mrb[4].mxu1 }
 0x100   :  { %195 = vst [vmem:[%s584_s2 + $0x28] sm:$0xff] %v351_v56  ;;  %v131_v59 = vpop.f32.mrb[5].mxu0  ;;  %203 = vst [vmem:[%s584_s2 + $0x68] sm:$0xff] %v363_v58  ;;  %v171_v60 = vpop.f32.mrb[5].mxu1  ;;  %v232_v0 = vmul.f32 %v351_v56, %v351_v56  ;;  %v240_v28 = vmul.f32 %v363_v58, %v363_v58 }
 0x101   :  { %194 = vst [vmem:[%s584_s2 + $0x20] sm:$0xff] %v131_v59  ;;  %v209_v61 = vadd.f32 %v208_v57, %v131_v59  ;;  %v231_v62 = vmul.f32 %v131_v59, %v131_v59  ;;  %v245_v63 = vadd.f32 %v244_v55, %v230_v54  ;;  %202 = vst [vmem:[%s584_s2 + $0x60] sm:$0xff] %v171_v60 }
 0x102   :  { %v239_v25 = vmul.f32 %v171_v60, %v171_v60 }
 0x103   :  { %v246_v1 = vadd.f32 %v245_v63, %v231_v62  ;;  %v354_v2 = vpop.f32.mrb[6].mxu0  ;;  %v210_v3 = vadd.f32 %v351_v56, %v209_v61  ;;  %v366_v4 = vpop.f32.mrb[6].mxu1 }
 0x104   :  { %197 = vst [vmem:[%s584_s2 + $0x38] sm:$0xff] %v354_v2  ;;  %v141_v5 = vpop.f32.mrb[7].mxu0  ;;  %205 = vst [vmem:[%s584_s2 + $0x78] sm:$0xff] %v366_v4  ;;  %v181_v6 = vpop.f32.mrb[7].mxu1  ;;  %v234_v10 = vmul.f32 %v354_v2, %v354_v2  ;;  %v242_v34 = vmul.f32 %v366_v4, %v366_v4 }
 0x105   :  { %196 = vst [vmem:[%s584_s2 + $0x30] sm:$0xff] %v141_v5  ;;  %v211_v7 = vadd.f32 %v210_v3, %v141_v5  ;;  %v233_v8 = vmul.f32 %v141_v5, %v141_v5  ;;  %v247_v9 = vadd.f32 %v246_v1, %v232_v0  ;;  %204 = vst [vmem:[%s584_s2 + $0x70] sm:$0xff] %v181_v6 }
 0x106   :  { %v241_v31 = vmul.f32 %v181_v6, %v181_v6 }
 0x107   :  { %v212_v11 = vadd.f32 %v354_v2, %v211_v7  ;;  %v248_v12 = vadd.f32 %v247_v9, %v233_v8 }
 0x109   :  { %v249_v14 = vadd.f32 %v248_v12, %v234_v10  ;;  %v213_v15 = vadd.f32 %v212_v11, %v151_v44 }
 0x10b   :  { %v250_v17 = vadd.f32 %v249_v14, %v235_v13  ;;  %v214_v18 = vadd.f32 %v357_v41, %v213_v15  ;;  %v264_v41 = vlaneseq }
 0x10d   :  { %v215_v20 = vadd.f32 %v214_v18, %v161_v51  ;;  %v251_v21 = vadd.f32 %v250_v17, %v236_v16  ;;  %v265_v46 = vshrl.u32 %v264_v41, 7 }
 0x10f   :  { %v252_v23 = vadd.f32 %v251_v21, %v237_v19  ;;  %v216_v24 = vadd.f32 %v360_v49, %v215_v20  ;;  %vm267_vm0 = vcmp.eq.s32.totalorder %v265_v46, 1  ;;  %vm266_vm1 = vcmp.eq.s32.totalorder %v265_v46, 0 }
 0x111   :  { %v217_v26 = vadd.f32 %v216_v24, %v171_v60  ;;  %v253_v27 = vadd.f32 %v252_v23, %v238_v22 }
 0x113   :  { %v254_v29 = vadd.f32 %v253_v27, %v239_v25  ;;  %v218_v30 = vadd.f32 %v363_v58, %v217_v26 }
 0x115   :  { %v219_v32 = vadd.f32 %v218_v30, %v181_v6  ;;  %v255_v33 = vadd.f32 %v254_v29, %v240_v28 }
 0x117   :  { %v220_v35 = vadd.f32 %v366_v4, %v219_v32  ;;  %v256_v36 = vadd.f32 %v255_v33, %v241_v31 }
 0x119   :  { %v221_v37 = vrot.slane %v220_v35, 4  ;;  %v257_v38 = vadd.f32 %v256_v36, %v242_v34 }
 0x11b   :  { %v222_v39 = vadd.f32 %v221_v37, %v220_v35  ;;  %v258_v40 = vrot.slane %v257_v38, 4 }
 0x11d   :  { %v223_v42 = vrot.slane %v222_v39, 2  ;;  %v259_v43 = vadd.f32 %v258_v40, %v257_v38 }
 0x11f   :  { %v224_v44 = vadd.f32 %v223_v42, %v222_v39  ;;  %v260_v45 = vrot.slane %v259_v43, 2 }
 0x121   :  { %v261_v47 = vadd.f32 %v260_v45, %v259_v43  ;;  %v225_v48 = vrot.slane %v224_v44, 1 }
 0x123   :  { %v262_v49 = vrot.slane %v261_v47, 1  ;;  %v226_v51 = vadd.f32 %v225_v48, %v224_v44 }
 0x125   :  { %v263_v50 = vadd.f32 %v262_v49, %v261_v47 }
 0x127   :  { %v268_v52 = vsel %vm267_vm0, %v263_v50, 0.0 }
 0x128   :  { %v269_v53 = vsel %vm266_vm1, %v226_v51, %v268_v52 }
 0x129   :  { %270 = vst [vmem:[%s585_s3] sm:$0xff] %v269_v53 }

</bundles_post_ra>
